<compile_context>
chip_gen: v7x
topology: tpu7x:2x2x1
jax: 0.10.0
libtpu: 0.0.40
codegen_flags: <defaults>
</compile_context>

<pallas_src>
import functools

import jax
import jax.numpy as jnp
from jax.experimental import pallas as pl
from jax.experimental.pallas import tpu as pltpu


def _nt_xent_kernel(z_row_ref, z_pos_ref, z_colT_ref, loss_ref,
                    row_scr, m_scr, l_scr, pos_scr, *, inv_temp):
    i = pl.program_id(0)
    j = pl.program_id(1)
    num_j = pl.num_programs(1)

    tm = z_row_ref.shape[0]
    tn = z_colT_ref.shape[1]

    @pl.when(j == 0)
    def _init():
        # Hoisted per-row-block prep (runs once per row block, not per j step):
        # scale by 1/T once, cast to the MXU dtype once, positives in f32.
        zr = z_row_ref[...].astype(jnp.float32) * jnp.float32(inv_temp)  # (tm, D)
        zp = z_pos_ref[...].astype(jnp.float32)                          # (tm, D)
        pos_scr[...] = jnp.sum(zr * zp, axis=1, keepdims=True)           # (tm, 1)
        row_scr[...] = zr.astype(row_scr.dtype)                          # (tm, D)
        m_scr[...] = jnp.full_like(m_scr, -jnp.inf)
        l_scr[...] = jnp.zeros_like(l_scr)

    # Similarity tile on the MXU: canonical (tm, D) x (D, tn) contraction.
    # LHS is the pre-scaled / pre-cast row scratch; RHS was pre-transposed and
    # pre-cast in the wrapper, so no per-tile transpose or cast is needed here.
    s = jax.lax.dot_general(
        row_scr[...], z_colT_ref[...],
        dimension_numbers=(((1,), (0,)), ((), ())),
        preferred_element_type=jnp.float32)                              # (tm, tn)

    def _online_update(sv):
        m_prev = m_scr[...]
        m_new = jnp.maximum(m_prev, jnp.max(sv, axis=1, keepdims=True))
        l_scr[...] = l_scr[...] * jnp.exp(m_prev - m_new) + jnp.sum(
            jnp.exp(sv - m_new), axis=1, keepdims=True)
        m_scr[...] = m_new

    # Only tiles that straddle the true diagonal pay for the iota/mask work.
    # Tile rows cover [i*tm, (i+1)*tm), cols cover [j*tn, (j+1)*tn).
    delta = i * tm - j * tn                      # (col - row) offset of the diagonal
    straddles = jnp.logical_and(delta > -tm, delta < tn)

    @pl.when(straddles)
    def _masked_update():
        cm = (jax.lax.broadcasted_iota(jnp.int32, (tm, tn), 1)
              - jax.lax.broadcasted_iota(jnp.int32, (tm, tn), 0))
        _online_update(jnp.where(cm == delta, jnp.float32(-1e30), s))

    @pl.when(jnp.logical_not(straddles))
    def _plain_update():
        _online_update(s)

    @pl.when(j == num_j - 1)
    def _finish():
        pos = pos_scr[...]
        m = m_scr[...]
        # The reference also repeats the positive among the "negatives", so it
        # appears twice in the denominator; pos is off-diagonal, hence m >= pos
        # (up to mixed-precision rounding), so exp(pos - m) is well behaved.
        denom = l_scr[...] + jnp.exp(pos - m)
        loss_ref[...] = -pos + m + jnp.log(denom)                        # (tm, 1)


def _pick_tile(total, cap, align):
    """Largest multiple of `align` dividing `total`, <= cap; else full extent."""
    best = None
    t = align
    while t <= min(cap, total):
        if total % t == 0:
            best = t
        t += align
    if best is not None:
        return best
    if total <= cap:
        return total   # full-extent block is always a legal BlockSpec dim
    # TODO(synk): pad + bounds-mask awkward batch sizes instead of erroring.
    raise ValueError(
        f"no multiple-of-{align} divisor of {total} <= {cap}; pad the batch")


def nt_xent_loss(z_i, z_j, temperature=0.5, *, block_rows=256, block_cols=512,
                 matmul_dtype=jnp.bfloat16, vmem_limit_bytes=48 * 1024 * 1024):
    """Pallas implementation of NT_Xent.forward (returns a scalar loss).

    Defaults (block_rows=256, block_cols=512, 48 MiB VMEM budget) are safe on
    v7x; on v5e/v6e (128 MiB VMEM) block_cols=1024 and vmem_limit ~96 MiB is a
    reasonable upgrade for large N.
    """
    assert z_i.shape == z_j.shape and z_i.ndim == 2
    b, d = z_i.shape
    assert b % 8 == 0, "batch must be a multiple of 8 (TPU sublane tiling)"
    n = 2 * b

    z = jnp.concatenate([z_i, z_j], axis=0).astype(jnp.float32)     # (N, D)
    # Column operand: pre-transposed (canonical MXU RHS, no per-tile transpose)
    # and pre-cast to the MXU dtype (halves the dominant HBM column stream).
    z_t = z.T.astype(matmul_dtype)                                   # (D, N)

    tm = _pick_tile(b, block_rows, 8)    # divides B -> n_row_blocks = N/tm even, >= 2
    tn = _pick_tile(n, block_cols, 128)  # lane-aligned (or full-extent) column tiles
    n_row_blocks = n // tm
    pos_shift = b // tm                  # partner block offset (n_row_blocks = 2*pos_shift)

    kernel = functools.partial(_nt_xent_kernel, inv_temp=1.0 / float(temperature))

    per_row = pl.pallas_call(
        kernel,
        out_shape=jax.ShapeDtypeStruct((n, 1), jnp.float32),
        grid_spec=pltpu.PrefetchScalarGridSpec(
            num_scalar_prefetch=0,
            grid=(n_row_blocks, n // tn),
            in_specs=[
                # row tile (f32; constant across j -> DMA'd once per row block)
                pl.BlockSpec((tm, d), lambda i, j: (i, 0)),
                # positive-partner tile: rows (i*tm + B) mod N
                pl.BlockSpec((tm, d),
                             lambda i, j: ((i + pos_shift) % n_row_blocks, 0)),
                # pre-transposed, pre-cast column tile (streams along reduction)
                pl.BlockSpec((d, tn), lambda i, j: (0, j)),
            ],
            out_specs=pl.BlockSpec((tm, 1), lambda i, j: (i, 0)),
            scratch_shapes=[
                pltpu.VMEM((tm, d), matmul_dtype),   # scaled+cast row tile (MXU LHS)
                pltpu.VMEM((tm, 1), jnp.float32),    # running row max
                pltpu.VMEM((tm, 1), jnp.float32),    # running exp sum
                pltpu.VMEM((tm, 1), jnp.float32),    # positives
            ],
        ),
        compiler_params=pltpu.CompilerParams(
            dimension_semantics=("parallel", "arbitrary"),
            vmem_limit_bytes=vmem_limit_bytes,
        ),
    )(z, z, z_t)

    # Final scalar reduction in plain JAX (keeps the row axis core-parallel).
    return jnp.sum(per_row) / jnp.float32(n)


def _nt_xent_ref(z_i, z_j, temperature=0.5):
    """Pure-JAX reference mirroring the PyTorch code, for verification."""
    b = z_i.shape[0]
    n = 2 * b
    z = jnp.concatenate([z_i, z_j], axis=0).astype(jnp.float32)
    sim = (z @ z.T) / temperature
    pos = jnp.concatenate(
        [jnp.diagonal(sim, offset=b), jnp.diagonal(sim, offset=-b)], axis=0
    ).reshape(n, 1)
    off_diag_mask = ~jnp.eye(n, dtype=bool)
    neg = sim[off_diag_mask].reshape(n, n - 1)
    logits = jnp.concatenate([pos, neg], axis=1)
    lse = jax.scipy.special.logsumexp(logits, axis=1)
    loss = jnp.sum(-logits[:, 0] + lse)
    return loss / n


if __name__ == "__main__":
    key = jax.random.PRNGKey(0)
    k1, k2 = jax.random.split(key)
    batch, hidden = 8, 32
    z_i = jax.random.normal(k1, (batch, hidden), dtype=jnp.float32)
    z_j = jax.random.normal(k2, (batch, hidden), dtype=jnp.float32)

    ref = _nt_xent_ref(z_i, z_j, temperature=0.5)

    # f32 MXU path (tight-ish tolerance).
    loss_f32 = jax.block_until_ready(
        nt_xent_loss(z_i, z_j, temperature=0.5, matmul_dtype=jnp.float32))
    assert jnp.allclose(loss_f32, ref, rtol=1e-2, atol=1e-2), (loss_f32, ref)

    # Default fast path: bf16 MXU operands, f32 accumulation / f32 positives.
    loss_bf16 = jax.block_until_ready(nt_xent_loss(z_i, z_j, temperature=0.5))
    assert jnp.allclose(loss_bf16, ref, rtol=5e-2, atol=1e-1), (loss_bf16, ref)

    print("KERNEL_OK")
</pallas_src>

<mosaic_0001>
module attributes {stable_mosaic.version = 11 : i64} {
  func.func @_nt_xent_kernel(%arg0: i32, %arg1: i32, %arg2: memref<8x32xf32, #tpu.memory_space<vmem>>, %arg3: memref<8x32xf32, #tpu.memory_space<vmem>>, %arg4: memref<32x16xf32, #tpu.memory_space<vmem>>, %arg5: memref<8x1xf32, #tpu.memory_space<vmem>>, %arg6: memref<8x32xf32, #tpu.memory_space<vmem>>, %arg7: memref<8x1xf32, #tpu.memory_space<vmem>>, %arg8: memref<8x1xf32, #tpu.memory_space<vmem>>, %arg9: memref<8x1xf32, #tpu.memory_space<vmem>>) attributes {dimension_semantics = [#tpu.dimension_semantics<parallel>, #tpu.dimension_semantics<arbitrary>], iteration_bounds = array<i64: 2, 1>, scalar_prefetch = 0 : i64, scratch_operands = 4 : i64, tpu.core_type = #tpu.core_type<tc>, window_params = [{transform_indices = @transform_0, window_bounds = array<i64: 8, 32>}, {transform_indices = @transform_1, window_bounds = array<i64: 8, 32>}, {transform_indices = @transform_2, window_bounds = array<i64: 32, 16>}, {transform_indices = @transform_3, window_bounds = array<i64: 8, 1>}]} {
    %c0_i32 = arith.constant 0 : i32
    %0 = arith.cmpi eq, %arg1, %c0_i32 : i32
    %1 = arith.extui %0 : i1 to i32
    %c0_i32_0 = arith.constant 0 : i32
    %2 = arith.cmpi ne, %1, %c0_i32_0 : i32
    scf.if %2 {
      %c0_9 = arith.constant 0 : index
      %c0_10 = arith.constant 0 : index
      %20 = vector.load %arg2[%c0_9, %c0_10] : memref<8x32xf32, #tpu.memory_space<vmem>>, vector<8x32xf32>
      %cst_11 = arith.constant 2.000000e+00 : f32
      %21 = vector.broadcast %cst_11 : f32 to vector<8x32xf32>
      %22 = arith.mulf %20, %21 : vector<8x32xf32>
      %c0_12 = arith.constant 0 : index
      %c0_13 = arith.constant 0 : index
      %23 = vector.load %arg3[%c0_12, %c0_13] : memref<8x32xf32, #tpu.memory_space<vmem>>, vector<8x32xf32>
      %24 = arith.mulf %22, %23 : vector<8x32xf32>
      %cst_14 = arith.constant dense<0.000000e+00> : vector<8xf32>
      %25 = vector.multi_reduction <add>, %24, %cst_14 [1] : vector<8x32xf32> to vector<8xf32>
      %26 = vector.shape_cast %25 : vector<8xf32> to vector<8x1xf32>
      %c0_15 = arith.constant 0 : index
      %c0_16 = arith.constant 0 : index
      %27 = vector.load %arg9[%c0_15, %c0_16] : memref<8x1xf32, #tpu.memory_space<vmem>>, vector<8x1xf32>
      tpu.vector_store %arg9[%c0_15, %c0_16], %26 {strides = array<i32>} : memref<8x1xf32, #tpu.memory_space<vmem>>, vector<8x1xf32>,
      %c0_17 = arith.constant 0 : index
      %c0_18 = arith.constant 0 : index
      %28 = vector.load %arg6[%c0_17, %c0_18] : memref<8x32xf32, #tpu.memory_space<vmem>>, vector<8x32xf32>
      tpu.vector_store %arg6[%c0_17, %c0_18], %22 {strides = array<i32>} : memref<8x32xf32, #tpu.memory_space<vmem>>, vector<8x32xf32>,
      %cst_19 = arith.constant 0xFF800000 : f32
      %29 = vector.broadcast %cst_19 : f32 to vector<8x1xf32>
      %c0_20 = arith.constant 0 : index
      %c0_21 = arith.constant 0 : index
      %30 = vector.load %arg7[%c0_20, %c0_21] : memref<8x1xf32, #tpu.memory_space<vmem>>, vector<8x1xf32>
      tpu.vector_store %arg7[%c0_20, %c0_21], %29 {strides = array<i32>} : memref<8x1xf32, #tpu.memory_space<vmem>>, vector<8x1xf32>,
      %cst_22 = arith.constant 0.000000e+00 : f32
      %31 = vector.broadcast %cst_22 : f32 to vector<8x1xf32>
      %c0_23 = arith.constant 0 : index
      %c0_24 = arith.constant 0 : index
      %32 = vector.load %arg8[%c0_23, %c0_24] : memref<8x1xf32, #tpu.memory_space<vmem>>, vector<8x1xf32>
      tpu.vector_store %arg8[%c0_23, %c0_24], %31 {strides = array<i32>} : memref<8x1xf32, #tpu.memory_space<vmem>>, vector<8x1xf32>,
    } else {
    }
    %c0 = arith.constant 0 : index
    %c0_1 = arith.constant 0 : index
    %3 = vector.load %arg6[%c0, %c0_1] : memref<8x32xf32, #tpu.memory_space<vmem>>, vector<8x32xf32>
    %c0_2 = arith.constant 0 : index
    %c0_3 = arith.constant 0 : index
    %4 = vector.load %arg4[%c0_2, %c0_3] : memref<32x16xf32, #tpu.memory_space<vmem>>, vector<32x16xf32>
    %cst = arith.constant dense<0.000000e+00> : vector<8x16xf32>
    %5 = tpu.matmul %3, %4, %cst {dimension_numbers = #tpu.dot_dimension_numbers<[1], [0], [0], [1], [0, 0, 1, 1], [], []>} : vector<8x32xf32>, vector<32x16xf32>, vector<8x16xf32> -> vector<8x16xf32>
    %c8_i32 = arith.constant 8 : i32
    %6 = arith.muli %arg0, %c8_i32 : i32
    %c16_i32 = arith.constant 16 : i32
    %7 = arith.muli %arg1, %c16_i32 : i32
    %8 = arith.subi %6, %7 : i32
    %c-8_i32 = arith.constant -8 : i32
    %9 = arith.cmpi sgt, %8, %c-8_i32 : i32
    %c16_i32_4 = arith.constant 16 : i32
    %10 = arith.cmpi slt, %8, %c16_i32_4 : i32
    %11 = arith.andi %9, %10 : i1
    %12 = arith.extui %11 : i1 to i32
    %c0_i32_5 = arith.constant 0 : i32
    %13 = arith.cmpi ne, %12, %c0_i32_5 : i32
    scf.if %13 {
      %20 = tpu.iota {dimensions = array<i32: 1>} : vector<8x16xi32>
      %21 = tpu.iota {dimensions = array<i32: 0>} : vector<8x16xi32>
      %22 = arith.subi %20, %21 : vector<8x16xi32>
      %23 = vector.broadcast %8 : i32 to vector<8x16xi32>
      %24 = arith.cmpi eq, %22, %23 : vector<8x16xi32>
      %cst_9 = arith.constant -1.000000e+30 : f32
      %25 = vector.broadcast %cst_9 : f32 to vector<8x16xf32>
      %26 = arith.select %24, %25, %5 : vector<8x16xi1>, vector<8x16xf32>
      %c0_10 = arith.constant 0 : index
      %c0_11 = arith.constant 0 : index
      %27 = vector.load %arg7[%c0_10, %c0_11] : memref<8x1xf32, #tpu.memory_space<vmem>>, vector<8x1xf32>
      %cst_12 = arith.constant dense<0xFF800000> : vector<8xf32>
      %28 = vector.multi_reduction <maximumf>, %26, %cst_12 [1] : vector<8x16xf32> to vector<8xf32>
      %29 = vector.shape_cast %28 : vector<8xf32> to vector<8x1xf32>
      %30 = arith.maximumf %27, %29 : vector<8x1xf32>
      %c0_13 = arith.constant 0 : index
      %c0_14 = arith.constant 0 : index
      %31 = vector.load %arg8[%c0_13, %c0_14] : memref<8x1xf32, #tpu.memory_space<vmem>>, vector<8x1xf32>
      %32 = arith.subf %27, %30 : vector<8x1xf32>
      %33 = math.exp %32 : vector<8x1xf32>
      %34 = arith.mulf %31, %33 : vector<8x1xf32>
      %35 = vector.broadcast %30 : vector<8x1xf32> to vector<8x16xf32>
      %36 = arith.subf %26, %35 : vector<8x16xf32>
      %37 = math.exp %36 : vector<8x16xf32>
      %cst_15 = arith.constant dense<0.000000e+00> : vector<8xf32>
      %38 = vector.multi_reduction <add>, %37, %cst_15 [1] : vector<8x16xf32> to vector<8xf32>
      %39 = vector.shape_cast %38 : vector<8xf32> to vector<8x1xf32>
      %40 = arith.addf %34, %39 : vector<8x1xf32>
      %c0_16 = arith.constant 0 : index
      %c0_17 = arith.constant 0 : index
      %41 = vector.load %arg8[%c0_16, %c0_17] : memref<8x1xf32, #tpu.memory_space<vmem>>, vector<8x1xf32>
      tpu.vector_store %arg8[%c0_16, %c0_17], %40 {strides = array<i32>} : memref<8x1xf32, #tpu.memory_space<vmem>>, vector<8x1xf32>,
      %c0_18 = arith.constant 0 : index
      %c0_19 = arith.constant 0 : index
      %42 = vector.load %arg7[%c0_18, %c0_19] : memref<8x1xf32, #tpu.memory_space<vmem>>, vector<8x1xf32>
      tpu.vector_store %arg7[%c0_18, %c0_19], %30 {strides = array<i32>} : memref<8x1xf32, #tpu.memory_space<vmem>>, vector<8x1xf32>,
    } else {
    }
    %true = arith.constant true
    %14 = arith.xori %11, %true : i1
    %15 = arith.extui %14 : i1 to i32
    %c0_i32_6 = arith.constant 0 : i32
    %16 = arith.cmpi ne, %15, %c0_i32_6 : i32
    scf.if %16 {
      %c0_9 = arith.constant 0 : index
      %c0_10 = arith.constant 0 : index
      %20 = vector.load %arg7[%c0_9, %c0_10] : memref<8x1xf32, #tpu.memory_space<vmem>>, vector<8x1xf32>
      %cst_11 = arith.constant dense<0xFF800000> : vector<8xf32>
      %21 = vector.multi_reduction <maximumf>, %5, %cst_11 [1] : vector<8x16xf32> to vector<8xf32>
      %22 = vector.shape_cast %21 : vector<8xf32> to vector<8x1xf32>
      %23 = arith.maximumf %20, %22 : vector<8x1xf32>
      %c0_12 = arith.constant 0 : index
      %c0_13 = arith.constant 0 : index
      %24 = vector.load %arg8[%c0_12, %c0_13] : memref<8x1xf32, #tpu.memory_space<vmem>>, vector<8x1xf32>
      %25 = arith.subf %20, %23 : vector<8x1xf32>
      %26 = math.exp %25 : vector<8x1xf32>
      %27 = arith.mulf %24, %26 : vector<8x1xf32>
      %28 = vector.broadcast %23 : vector<8x1xf32> to vector<8x16xf32>
      %29 = arith.subf %5, %28 : vector<8x16xf32>
      %30 = math.exp %29 : vector<8x16xf32>
      %cst_14 = arith.constant dense<0.000000e+00> : vector<8xf32>
      %31 = vector.multi_reduction <add>, %30, %cst_14 [1] : vector<8x16xf32> to vector<8xf32>
      %32 = vector.shape_cast %31 : vector<8xf32> to vector<8x1xf32>
      %33 = arith.addf %27, %32 : vector<8x1xf32>
      %c0_15 = arith.constant 0 : index
      %c0_16 = arith.constant 0 : index
      %34 = vector.load %arg8[%c0_15, %c0_16] : memref<8x1xf32, #tpu.memory_space<vmem>>, vector<8x1xf32>
      tpu.vector_store %arg8[%c0_15, %c0_16], %33 {strides = array<i32>} : memref<8x1xf32, #tpu.memory_space<vmem>>, vector<8x1xf32>,
      %c0_17 = arith.constant 0 : index
      %c0_18 = arith.constant 0 : index
      %35 = vector.load %arg7[%c0_17, %c0_18] : memref<8x1xf32, #tpu.memory_space<vmem>>, vector<8x1xf32>
      tpu.vector_store %arg7[%c0_17, %c0_18], %23 {strides = array<i32>} : memref<8x1xf32, #tpu.memory_space<vmem>>, vector<8x1xf32>,
    } else {
    }
    %c0_i32_7 = arith.constant 0 : i32
    %17 = arith.cmpi eq, %arg1, %c0_i32_7 : i32
    %18 = arith.extui %17 : i1 to i32
    %c0_i32_8 = arith.constant 0 : i32
    %19 = arith.cmpi ne, %18, %c0_i32_8 : i32
    scf.if %19 {
      %c0_9 = arith.constant 0 : index
      %c0_10 = arith.constant 0 : index
      %20 = vector.load %arg9[%c0_9, %c0_10] : memref<8x1xf32, #tpu.memory_space<vmem>>, vector<8x1xf32>
      %c0_11 = arith.constant 0 : index
      %c0_12 = arith.constant 0 : index
      %21 = vector.load %arg7[%c0_11, %c0_12] : memref<8x1xf32, #tpu.memory_space<vmem>>, vector<8x1xf32>
      %c0_13 = arith.constant 0 : index
      %c0_14 = arith.constant 0 : index
      %22 = vector.load %arg8[%c0_13, %c0_14] : memref<8x1xf32, #tpu.memory_space<vmem>>, vector<8x1xf32>
      %23 = arith.subf %20, %21 : vector<8x1xf32>
      %24 = math.exp %23 : vector<8x1xf32>
      %25 = arith.addf %22, %24 : vector<8x1xf32>
      %cst_15 = arith.constant 0.000000e+00 : f32
      %26 = vector.broadcast %cst_15 : f32 to vector<8x1xf32>
      %27 = arith.subf %26, %20 : vector<8x1xf32>
      %28 = arith.addf %27, %21 : vector<8x1xf32>
      %29 = math.log %25 : vector<8x1xf32>
      %30 = arith.addf %28, %29 : vector<8x1xf32>
      %c0_16 = arith.constant 0 : index
      %c0_17 = arith.constant 0 : index
      %31 = vector.load %arg5[%c0_16, %c0_17] : memref<8x1xf32, #tpu.memory_space<vmem>>, vector<8x1xf32>
      tpu.vector_store %arg5[%c0_16, %c0_17], %30 {strides = array<i32>} : memref<8x1xf32, #tpu.memory_space<vmem>>, vector<8x1xf32>,
    } else {
    }
    return
  }
  func.func @transform_0(%arg0: i32, %arg1: i32) -> (i32, i32) {
    %c0_i32 = arith.constant 0 : i32
    %c0_i32_0 = arith.constant 0 : i32
    return %arg0, %c0_i32 : i32, i32
  }
  func.func @transform_1(%arg0: i32, %arg1: i32) -> (i32, i32) {
    %c1_i32 = arith.constant 1 : i32
    %0 = arith.addi %arg0, %c1_i32 : i32
    %c2_i32 = arith.constant 2 : i32
    %c0_i32 = arith.constant 0 : i32
    %1 = arith.cmpi eq, %c2_i32, %c0_i32 : i32
    %c1_i32_0 = arith.constant 1 : i32
    %2 = arith.select %1, %c1_i32_0, %c2_i32 : i32
    %3 = arith.remsi %0, %2 : i32
    %c0_i32_1 = arith.constant 0 : i32
    %4 = arith.cmpi ne, %3, %c0_i32_1 : i32
    %c0_i32_2 = arith.constant 0 : i32
    %5 = arith.cmpi slt, %3, %c0_i32_2 : i32
    %c0_i32_3 = arith.constant 0 : i32
    %6 = arith.cmpi slt, %2, %c0_i32_3 : i32
    %7 = arith.xori %5, %6 : i1
    %8 = arith.andi %7, %4 : i1
    %9 = arith.addi %3, %2 : i32
    %10 = arith.select %8, %9, %3 : i32
    %c0_i32_4 = arith.constant 0 : i32
    %c0_i32_5 = arith.constant 0 : i32
    return %10, %c0_i32_4 : i32, i32
  }
  func.func @transform_2(%arg0: i32, %arg1: i32) -> (i32, i32) {
    %c0_i32 = arith.constant 0 : i32
    %c0_i32_0 = arith.constant 0 : i32
    return %c0_i32, %arg1 : i32, i32
  }
  func.func @transform_3(%arg0: i32, %arg1: i32) -> (i32, i32) {
    %c0_i32 = arith.constant 0 : i32
    %c0_i32_0 = arith.constant 0 : i32
    return %arg0, %c0_i32 : i32, i32
  }
}

</mosaic_0001>

<bundles_post_ra>
// kernel: tpu_custom_call.1
= control target key start
LH: loop header
LB: loop body
LE: loop exit
PB: predicated region body
PF: predicated region fallthrough
CT: control target
= control target key end

     0   :  { %s715_s12 = smov 0   ;;  %s717_s13 = smov 0   ;;  %s795_s0 = inlined_call_operand.vmem [shape: f32[16,32], index: 0, kind: input, shape index: {}]   ;;  %s796_s1 = inlined_call_operand.vmem [shape: f32[16,32], index: 1, kind: input, shape index: {}]   ;;  %s797_s2 = inlined_call_operand.vmem [shape: f32[32,16], index: 2, kind: input, shape index: {}]   ;;  %s798_s3 = inlined_call_operand.vmem [shape: f32[16,1], index: 3, kind: output, shape index: {}]  }
   0x1   :  { %s719_s14 = smov 0  }
   0x2 LB: > { %s25_s15 = sadd.s32 1, %s683_s13  ;;  %p588_p0 = scmp.ge.s32.totalorder %s687_s14, 1  ;;  %s687_s14 = sphi %s719_s14, %s13_s14   ;;  %s683_s13 = sphi %s717_s13, %s801_s13   ;;  %s679_s12 = sphi %s715_s12, %s800_s12  }
   0x3   : > { %p27_p1 = scmp.ge.s32.totalorder %s25_s15, 2  ;;  %p218_p2 = scmp.lt.s32.totalorder %s687_s14, 3 }
   0x5   : > { %s803_s15 = smov (%p27_p1, %s25_s15), 0  ;;  %p219_p3 = pnand %p588_p0, %p218_p2 }
   0x6   : > { %v321_v0 = vld [vmem:[%s797_s2] sm:$0xff] (!%p219_p3)  ;;  %v322_v1 = vld [vmem:[%s797_s2 + $0x8] sm:$0xff] (!%p219_p3)  ;;  %v323_v2 = vld [vmem:[%s797_s2 + $0x10] sm:$0xff] (!%p219_p3)  ;;  %vm315_vm0 = vcmask (!%p219_p3), 7168   ;;  %v689_v3 = vmov (!%p219_p3), 0.0|0.0   ;;  %v690_v6 = vmov (!%p219_p3), -inf  }
   0x7   : > { %222 = sbr.rel (%p219_p3) target bundleno = 1145 (0x479), region = 32  ;;  %615 = vmatprep.subr.bf16.mxu0 (!%p219_p3), %v689_v3  ;;  %v616_v4 = vpack.c.bf16 (!%p219_p3), %v322_v1, %v321_v0  ;;  %v324_v5 = vld [vmem:[%s797_s2 + $0x18] sm:$0xff] (!%p219_p3)  ;;  %318 = vst.msk [vmem:[#allocation3] sm:$0xff] (!%p219_p3), %vm315_vm0, %v690_v6  ;;  %p261_p4 = scmp.lt.s32.totalorder (!%p219_p3), %s679_s12, 1  ;;  %v691_v7 = vmov (!%p219_p3), 0.0   ;;  %vm692_vm1 = vmmov (!%p219_p3), 0  }
   0x8   : > { %s265_s24 = sadd.s32 (!%p219_p3), 1, %s679_s12  ;;  %319 = vst.msk [vmem:[#allocation4] sm:$0xff] (!%p219_p3), %vm315_vm0, %v691_v7  ;;  %612 = vmatprep.mubr.msk.f32.mxu0 (!%p219_p3), %vm692_vm1, %v691_v7  ;;  %v619_v8 = vpack.c.bf16 (!%p219_p3), %v324_v5, %v323_v2  ;;  %vm311_vm2 = vcmask (!%p219_p3), 261120   ;;  %s596_s19 = sshll.u32 (!%p219_p3), %s679_s12, 3 }
   0x9   : > { %s267_s25 = ssub.s32 (!%p219_p3), 0, %s265_s24  ;;  %617 = vmatpush3.bf16.msra.mxu0 (!%p219_p3), %v616_v4  ;;  %p266_p5 = scmp.lt.s32.totalorder (!%p219_p3), %s265_s24, 0 }
   0xa   : > { %618 = vmatprep.subr.bf16.mxu0 (!%p219_p3), %v689_v3  ;;  %s590_s27 = smin.u32 (!%p219_p3), %s267_s25, %s265_s24  ;;  %p402_p8 = scmp.gt.s32.totalorder (!%p219_p3), %s596_s19, 4294967288 }
   0xb   : > { %s269_s29 = sand.u32 (!%p219_p3), 1, %s590_s27   ;;  %p403_p9 = scmp.lt.s32.totalorder (!%p219_p3), %s596_s19, 16 }
   0xc   : > { %s270_s9 = ssub.s32 (!%p219_p3), 0, %s269_s29 }
   0xd   : > { %620 = vmatpush3.bf16.msra.mxu0 (!%p219_p3), %v619_v8  ;;  %p767_p10 = pnand (!%p219_p3), %p403_p9, %p402_p8 }
   0xe   : > { %s262_s26 = scalar_select %p261_p4, %s679_s12, 1 }
   0xf   : > { %s805_s9 = smov (!%p266_p5, %s270_s9), %s269_s29  ;;  %v408_v18 = vlaneseq (!%p767_p10)  ;;  %v413_v21 = vstv (!%p767_p10), %s596_s19  ;;  %vm417_vm3 = vcmask (!%p767_p10), 130048   ;;  %v693_v25 = vmov (!%p767_p10), 0   ;;  %v416_v26 = vld [vmem:[#allocation3] sm:$0xff] (!%p767_p10)  ;;  %v422_v37 = vld [vmem:[#allocation4] sm:$0xff] (!%p767_p10) }
  0x10   : > { %s589_s28 = sshll.u32 %s262_s26, 3  ;;  %p592_p6 = scmp.lt.s32.totalorder %s805_s9, 0  ;;  %651 = vset.pattern.permute.xlu0 (!%p767_p10), %v693_v25 }
  0x11   : > { %s264_s5 = scalar_lea.vmem %s795_s0, %s589_s28  ;;  %s758_s8 = scalar_lea.vmem %s798_s3, %s589_s28  ;;  %v409_v19 = vand.u32 (!%p767_p10), 127, %v408_v18  ;;  %v411_v20 = vshrl.u32 (!%p767_p10), %v408_v18, 7 }
  0x12   : > { %v307_v9 = vld [vmem:[%s264_s5] sm:$0xff]  ;;  %s276_s10 = sadd.s32 2, %s805_s9 }
  0x13   : > { %v308_v10 = vmul.f32 2.0, %v307_v9  ;;  %s807_s10 = smov (!%p592_p6, %s276_s10), %s805_s9  ;;  %v412_v22 = vsub.s32 (!%p767_p10), %v409_v19, %v411_v20 }
  0x14   : > { %p278_p7 = scmp.lt.s32.totalorder %s807_s10, 1 }
  0x15   : > { %317 = vst.msk [vmem:[#allocation2] sm:$0xff] %vm311_vm2, %v308_v10  ;;  %vm414_vm4 = vcmp.eq.s32.totalorder (!%p767_p10), %v412_v22, %v413_v21 }
  0x16   : > { %s809_s10 = smov (!%p278_p7, %s807_s10), 1 }
  0x17   : > { %s593_s11 = sshll.u32 %s809_s10, 3 }
  0x18   : > { %s281_s18 = scalar_lea.vmem %s796_s1, %s593_s11 }
  0x19   : > { %v309_v12 = vld [vmem:[%s281_s18] sm:$0xff] }
  0x1a   : > { %v310_v13 = vmul.f32 %v309_v12, %v308_v10 }
  0x1c   : > { %v320_v11 = vld [vmem:[#allocation2] sm:$0xff]  ;;  %v312_v14 = vsel %vm311_vm2, %v310_v13, 0.0 }
  0x1d   : > { %613 = vmatmul.mubr.msk.f32.vlgmr.msra.gmra.mrb[0].mxu0 %vm311_vm2, %v320_v11  ;;  %313 = vadd.xlane.f32.xlu0 %v312_v14 }
  0xaa   : > { %v314_v15 = vpop.xlane.xlu0 %313 }
  0xab   : > { %316 = vst.msk [vmem:[#allocation5] sm:$0xff] %vm315_vm0, %v314_v15 }
  0xeb   : > { %407 = sbr.rel (%p767_p10) target bundleno = 676 (0x2a4), region = 40 }
  0xf0   : > { %v395_v16 = vpop.f32.mrb[0].mxu0 }
  0xf1   : > { %v614_v17 = vpop.f32.mrb[1].mxu0  ;;  %v415_v23 = vsel (!%p767_p10), %vm414_vm4, -1e+30, %v395_v16 }
  0xf2   : > { %v418_v24 = vsel %vm417_vm3, %v415_v23, -inf }
  0xf3   : > { %419 = vmax.xlane.f32.xlu0 %v418_v24 }
 0x180   : > { %v420_v27 = vpop.xlane.xlu0 %419 }
 0x181   : > { %v421_v28 = vmax.f32 %v416_v26, %v420_v27 }
 0x183   : > { %v423_v29 = vsub.f32 %v416_v26, %v421_v28  ;;  %441 = vst.msk [vmem:[#allocation3] sm:$0xff] %vm315_vm0, %v421_v28  ;;  %429 = vperm.xlu0 %651, %v421_v28  }
 0x185   : > { %v424_v35 = vmul.f32 1.442695, %v423_v29 }
 0x202   : > { %v430_v30 = vpop.permute.xlu0 %429 }
 0x203   : > { %v432_v31 = vsub.f32 %v415_v23, %v430_v30 }
 0x205   : > { %v433_v32 = vmul.f32 1.442695, %v432_v31 }
 0x207   : > { %652 = vpow2.f32 %v433_v32 }
 0x208   : > { %654 = vpow2.f32 %v424_v35 }
 0x211   : > { %v653_v33 = vpop.eup %652 }
 0x212   : > { %v435_v34 = vsel %vm417_vm3, %v653_v33, 0.0  ;;  %v655_v36 = vpop.eup %654 }
 0x213   : > { %436 = vadd.xlane.f32.xlu1 %v435_v34  ;;  %v426_v38 = vmul.f32 %v655_v36, %v422_v37 }
 0x2a0   : > { %v437_v39 = vpop.xlane.xlu1 %436 }
 0x2a1   : > { %v438_v40 = vadd.f32 %v437_v39, %v426_v38 }
 0x2a3   : > { %440 = vst.msk [vmem:[#allocation4] sm:$0xff] %vm315_vm0, %v438_v40 }
 0x2a4 PF: > { %444 = sbr.rel (!%p767_p10) target bundleno = 1111 (0x457), region = 44  ;;  %vm446_vm5 = vcmask (%p767_p10), 130048   ;;  %v694_v42 = vmov (%p767_p10), 0   ;;  %v445_v43 = vld [vmem:[#allocation3] sm:$0xff] (%p767_p10) }
 0x2a5   : > { %v447_v41 = vsel (%p767_p10), %vm446_vm5, %v395_v16, -inf  ;;  %656 = vset.pattern.permute.xlu0 (%p767_p10), %v694_v42 }
 0x2a6   : > { %448 = vmax.xlane.f32.xlu0 (%p767_p10), %v447_v41 }
 0x2aa   : > { %v451_v54 = vld [vmem:[#allocation4] sm:$0xff] (%p767_p10) }
 0x333   : > { %v449_v44 = vpop.xlane.xlu0 %448 }
 0x334   : > { %v450_v45 = vmax.f32 %v445_v43, %v449_v44 }
 0x336   : > { %v452_v46 = vsub.f32 %v445_v43, %v450_v45  ;;  %470 = vst.msk [vmem:[#allocation3] sm:$0xff] %vm315_vm0, %v450_v45  ;;  %458 = vperm.xlu0 %656, %v450_v45  }
 0x338   : > { %v453_v52 = vmul.f32 1.442695, %v452_v46 }
 0x3b5   : > { %v459_v47 = vpop.permute.xlu0 %458 }
 0x3b6   : > { %v461_v48 = vsub.f32 %v395_v16, %v459_v47 }
 0x3b8   : > { %v462_v49 = vmul.f32 1.442695, %v461_v48 }
 0x3ba   : > { %657 = vpow2.f32 %v462_v49 }
 0x3bb   : > { %659 = vpow2.f32 %v453_v52 }
 0x3c4   : > { %v658_v50 = vpop.eup %657 }
 0x3c5   : > { %v464_v51 = vsel %vm446_vm5, %v658_v50, 0.0  ;;  %v660_v53 = vpop.eup %659 }
 0x3c6   : > { %465 = vadd.xlane.f32.xlu1 %v464_v51  ;;  %v455_v55 = vmul.f32 %v660_v53, %v451_v54 }
 0x453   : > { %v466_v56 = vpop.xlane.xlu1 %465 }
 0x454   : > { %v467_v57 = vadd.f32 %v466_v56, %v455_v55 }
 0x456   : > { %469 = vst.msk [vmem:[#allocation4] sm:$0xff] %vm315_vm0, %v467_v57 }
 0x457 PF: > { %v474_v58 = vld [vmem:[#allocation5] sm:$0xff]  ;;  %v475_v59 = vld [vmem:[#allocation3] sm:$0xff] }
 0x458   : > { %v477_v60 = vsub.f32 %v474_v58, %v475_v59  ;;  %v481_v1 = vsub.f32 0.0, %v474_v58 }
 0x45a   : > { %v478_v61 = vmul.f32 1.442695, %v477_v60  ;;  %v482_v2 = vadd.f32 %v481_v1, %v475_v59 }
 0x45c   : > { %661 = vpow2.f32 %v478_v61 }
 0x45d   : > { %v476_v62 = vld [vmem:[#allocation4] sm:$0xff] }
 0x466   : > { %v662_v63 = vpop.eup %661 }
 0x467   : > { %v480_v0 = vadd.f32 %v662_v63, %v476_v62 }
 0x469   : > { %663 = vlog2.f32 %v480_v0 }
 0x473   : > { %v664_v3 = vpop.eup %663 }
 0x474   : > { %v484_v4 = vmul.f32 0.6931472, %v664_v3 }
 0x476   : > { %v485_v5 = vadd.f32 %v484_v4, %v482_v2 }
 0x478   : > { %487 = vst.msk [vmem:[%s758_s8] sm:$0xff] %vm315_vm0, %v485_v5 }
 0x479 PF: > { %s13_s14 = sadd.s32 1, %s687_s14   ;;  %s800_s12 = smov %s683_s13 }
 0x47a   : > { %p10_p11 = scmp.ge.s32.totalorder %s13_s14, 4   ;;  %s801_s13 = smov %s803_s15 }
 0x47c   :  { %12 = sbr.rel (!%p10_p11) target bundleno = 2 (0x2), region = 84 }

</bundles_post_ra>
